<compile_context>
chip_gen: v7x
topology: tpu7x:2x2x1
jax: 0.10.0
libtpu: 0.0.40
codegen_flags: <defaults>
</compile_context>

<pallas_src>
import functools

import jax
import jax.numpy as jnp
from jax.experimental import pallas as pl
from jax.experimental.pallas import tpu as pltpu

_MIB = 1 << 20


def _cdiv(a, b):
    return -(-a // b)


def _device_generation():
    """Best-effort TPU generation tag ('v7', 'v6', 'v5', 'v4' or '')."""
    try:
        kind = jax.devices()[0].device_kind.lower()
    except Exception:
        return ""
    for gen in ("v7", "v6", "v5", "v4"):
        if gen in kind:
            return gen
    return ""


def _block_budget(itemsize):
    """Return (target_block_bytes, vmem_cap_bytes, per_block_factor, min_steps)."""
    gen = _device_generation()
    if gen == "v7":
        target, cap, min_steps = 6 * _MIB, 48 * _MIB, 8   # 64 MiB VMEM, 3.2 TB/s HBM, 2 TCs
    elif gen == "v6":
        target, cap, min_steps = 4 * _MIB, 96 * _MIB, 4   # 128 MiB physical VMEM
    elif gen in ("v5", "v4"):
        target, cap, min_steps = 2 * _MIB, 96 * _MIB, 4   # HBM-bound; small blocks suffice
    else:
        target, cap, min_steps = 4 * _MIB, 64 * _MIB, 4
    # Per grid step: 2x(in block) + 2x(out block) double-buffered + ~3 f32-sized temps.
    per_block_factor = 4.0 + 3.0 * (4.0 / float(itemsize))
    max_by_cap = int(cap / per_block_factor)
    return min(target, max_by_cap), cap, per_block_factor, min_steps


def _pick_spatial_tile(hw, c, itemsize, max_block_bytes, min_total_steps, batch):
    """Largest lane-aligned spatial tile that fits the block budget.

    Prefers lane-dense (unmasked) stores by choosing a multiple-of-128 tile
    that divides hw when one exists; otherwise only the final cdiv tail block
    is masked.  Shrinks the tile if the grid would be too short to keep the
    DMA pipeline warm / both v7x TensorCores busy.
    """
    max_tile = max(max_block_bytes // (c * itemsize), 128)
    max_tile = (max_tile // 128) * 128
    if max_tile == 0:
        max_tile = 128

    if hw <= max_tile:
        tile = hw                               # full spatial extent: always legal
    elif hw % 128 == 0:
        tile = None
        t = max_tile
        while t >= 128:
            if hw % t == 0:                     # divisor -> every block lane-dense
                tile = t
                break
            t -= 128
        if tile is None or tile * 4 < max_tile:
            tile = max_tile                     # accept one masked tail block
    else:
        tile = max_tile                         # only the tail block is masked

    # Ensure enough grid steps for pipeline warm-up / megacore sharding.
    if hw > 128 and batch * _cdiv(hw, tile) < min_total_steps:
        want = _cdiv(min_total_steps, batch)            # desired steps per batch
        target = max(128, ((_cdiv(hw, want) + 127) // 128) * 128)
        upper = tile if tile % 128 == 0 else max_tile
        target = min(target, upper)
        if hw % 128 == 0:
            t = target
            while t >= 128:
                if hw % t == 0:
                    return t
                t -= 128
        return target
    return tile


def _layernorm_kernel(x_ref, w_ref, *rest, bias_free: bool, eps: float, inv_c: float):
    if bias_free:
        (o_ref,) = rest
    else:
        b_ref, o_ref = rest

    x = x_ref[0].astype(jnp.float32)                      # (C, tile_hw)
    # One-pass statistics: single sweep over the block (XLU cross-sublane sums).
    s1 = jnp.sum(x, axis=0, keepdims=True)                # (1, tile_hw)
    s2 = jnp.sum(x * x, axis=0, keepdims=True)            # (1, tile_hw)
    mu = s1 * inv_c
    var = jnp.maximum(s2 * inv_c - mu * mu, 0.0)          # unbiased=False
    inv = jax.lax.rsqrt(var + eps)                        # EUP
    w = w_ref[...].astype(jnp.float32)                    # (C, 1) broadcast

    if bias_free:
        # BiasFree_LayerNorm: variance uses the mean, but x is NOT recentered.
        y = x * (inv * w)
    else:
        y = (x - mu) * (inv * w) + b_ref[...].astype(jnp.float32)

    o_ref[0] = y.astype(o_ref.dtype)


def layernorm_nchw(x, weight, bias=None, layer_norm_type: str = "WithBias",
                   eps: float = 1e-5, max_block_bytes: int | None = None):
    """Pallas implementation of PRNet LayerNorm: normalize over C in NCHW."""
    b, c, h, w = x.shape
    hw = h * w
    x3 = x.reshape(b, c, hw)                              # free reshape (no transpose)

    itemsize = x.dtype.itemsize
    target_bytes, vmem_cap, per_block_factor, min_steps = _block_budget(itemsize)
    if max_block_bytes is None:
        max_block_bytes = target_bytes

    tile = _pick_spatial_tile(hw, c, itemsize, max_block_bytes, min_steps, b)
    grid = (b, pl.cdiv(hw, tile))

    block_bytes = c * tile * itemsize
    vmem_limit = int(per_block_factor * block_bytes) + _MIB
    vmem_limit = max(8 * _MIB, min(vmem_limit, vmem_cap))

    bias_free = (layer_norm_type == "BiasFree")

    in_specs = [
        pl.BlockSpec((1, c, tile), lambda bi, si: (bi, 0, si)),   # x block
        pl.BlockSpec((c, 1), lambda bi, si: (0, 0)),              # weight
    ]
    args = [x3, weight.reshape(c, 1)]
    if not bias_free:
        in_specs.append(pl.BlockSpec((c, 1), lambda bi, si: (0, 0)))  # bias
        args.append(bias.reshape(c, 1))

    kernel = functools.partial(_layernorm_kernel, bias_free=bias_free,
                               eps=eps, inv_c=1.0 / c)

    cost = pl.CostEstimate(
        flops=10 * b * c * hw,
        transcendentals=b * hw,
        bytes_accessed=2 * b * c * hw * itemsize + (1 if bias_free else 2) * c * itemsize,
    )

    y3 = pl.pallas_call(
        kernel,
        out_shape=jax.ShapeDtypeStruct((b, c, hw), x.dtype),
        grid_spec=pltpu.PrefetchScalarGridSpec(
            num_scalar_prefetch=0,
            grid=grid,
            in_specs=in_specs,
            out_specs=pl.BlockSpec((1, c, tile), lambda bi, si: (bi, 0, si)),
        ),
        compiler_params=pltpu.CompilerParams(
            # Both grid axes are independent; "parallel" lets v7x shard them
            # across its two TensorCores (no-op on v5e/v6e).
            dimension_semantics=("parallel", "parallel"),
            vmem_limit_bytes=vmem_limit),
        cost_estimate=cost,
    )(*args)

    return y3.reshape(b, c, h, w)


def _reference(x, weight, bias, layer_norm_type, eps=1e-5):
    xf = x.astype(jnp.float32)
    mu = jnp.mean(xf, axis=1, keepdims=True)
    var = jnp.mean((xf - mu) ** 2, axis=1, keepdims=True)
    wv = weight.reshape(1, -1, 1, 1).astype(jnp.float32)
    if layer_norm_type == "BiasFree":
        y = xf / jnp.sqrt(var + eps) * wv
    else:
        bv = bias.reshape(1, -1, 1, 1).astype(jnp.float32)
        y = (xf - mu) / jnp.sqrt(var + eps) * wv + bv
    return y.astype(x.dtype)


if __name__ == "__main__":
    key = jax.random.PRNGKey(0)

    B, C, H, W = 2, 32, 16, 16
    x = jax.random.normal(key, (B, C, H, W), dtype=jnp.float32)

    # Deterministic parameter init, matching the module's __init__.
    weight = jnp.ones((C,), jnp.float32)
    bias = jnp.zeros((C,), jnp.float32)

    # WithBias variant (module default when LayerNorm_type != 'BiasFree').
    out_wb = jax.block_until_ready(layernorm_nchw(x, weight, bias, "WithBias"))
    ref_wb = _reference(x, weight, bias, "WithBias")
    assert jnp.allclose(out_wb, ref_wb, atol=1e-4, rtol=1e-4)

    # BiasFree variant (no bias input at all).
    out_bf = jax.block_until_ready(layernorm_nchw(x, weight, None, "BiasFree"))
    ref_bf = _reference(x, weight, None, "BiasFree")
    assert jnp.allclose(out_bf, ref_bf, atol=1e-4, rtol=1e-4)

    # Odd spatial size with a tiny forced block budget to exercise the
    # cdiv tail path (last spatial block extends past H*W, masked on store).
    x2 = jax.random.normal(jax.random.PRNGKey(1), (1, C, 10, 20), dtype=jnp.float32)
    out_tail = jax.block_until_ready(
        layernorm_nchw(x2, weight, bias, "WithBias", max_block_bytes=C * 128 * 4))
    ref_tail = _reference(x2, weight, bias, "WithBias")
    assert jnp.allclose(out_tail, ref_tail, atol=1e-4, rtol=1e-4)

    # Larger, 128-multiple spatial extent: exercises the lane-dense divisor
    # tiling and the min-grid-steps adjustment.
    x3 = jax.random.normal(jax.random.PRNGKey(2), (2, C, 32, 32), dtype=jnp.float32)
    out_big = jax.block_until_ready(layernorm_nchw(x3, weight, bias, "WithBias"))
    ref_big = _reference(x3, weight, bias, "WithBias")
    assert jnp.allclose(out_big, ref_big, atol=1e-4, rtol=1e-4)

    print("KERNEL_OK")
</pallas_src>

<mosaic_0001>
module attributes {stable_mosaic.version = 11 : i64} {
  func.func @_layernorm_kernel(%arg0: i32, %arg1: i32, %arg2: memref<1x32x128xf32, #tpu.memory_space<vmem>>, %arg3: memref<32x1xf32, #tpu.memory_space<vmem>>, %arg4: memref<32x1xf32, #tpu.memory_space<vmem>>, %arg5: memref<1x32x128xf32, #tpu.memory_space<vmem>>) attributes {dimension_semantics = [#tpu.dimension_semantics<parallel>, #tpu.dimension_semantics<parallel>], iteration_bounds = array<i64: 2, 2>, scalar_prefetch = 0 : i64, scratch_operands = 0 : i64, tpu.core_type = #tpu.core_type<tc>, window_params = [{transform_indices = @transform_0, window_bounds = array<i64: 1, 32, 128>}, {pipeline_mode = #tpu.pipeline_mode<synchronous>, transform_indices = @transform_1, window_bounds = array<i64: 32, 1>}, {pipeline_mode = #tpu.pipeline_mode<synchronous>, transform_indices = @transform_2, window_bounds = array<i64: 32, 1>}, {transform_indices = @transform_3, window_bounds = array<i64: 1, 32, 128>}]} {
    %c0 = arith.constant 0 : index
    %c0_0 = arith.constant 0 : index
    %c0_1 = arith.constant 0 : index
    %0 = vector.load %arg2[%c0, %c0_0, %c0_1] : memref<1x32x128xf32, #tpu.memory_space<vmem>>, vector<1x32x128xf32>
    %1 = vector.shape_cast %0 : vector<1x32x128xf32> to vector<32x128xf32>
    %cst = arith.constant dense<0.000000e+00> : vector<128xf32>
    %2 = vector.multi_reduction <add>, %1, %cst [0] : vector<32x128xf32> to vector<128xf32>
    %3 = vector.shape_cast %2 : vector<128xf32> to vector<1x128xf32>
    %4 = arith.mulf %1, %1 : vector<32x128xf32>
    %cst_2 = arith.constant dense<0.000000e+00> : vector<128xf32>
    %5 = vector.multi_reduction <add>, %4, %cst_2 [0] : vector<32x128xf32> to vector<128xf32>
    %6 = vector.shape_cast %5 : vector<128xf32> to vector<1x128xf32>
    %cst_3 = arith.constant 3.125000e-02 : f32
    %7 = vector.broadcast %cst_3 : f32 to vector<1x128xf32>
    %8 = arith.mulf %3, %7 : vector<1x128xf32>
    %cst_4 = arith.constant 3.125000e-02 : f32
    %9 = vector.broadcast %cst_4 : f32 to vector<1x128xf32>
    %10 = arith.mulf %6, %9 : vector<1x128xf32>
    %11 = arith.mulf %8, %8 : vector<1x128xf32>
    %12 = arith.subf %10, %11 : vector<1x128xf32>
    %cst_5 = arith.constant 0.000000e+00 : f32
    %13 = vector.broadcast %cst_5 : f32 to vector<1x128xf32>
    %14 = arith.maximumf %12, %13 : vector<1x128xf32>
    %cst_6 = arith.constant 9.99999974E-6 : f32
    %15 = vector.broadcast %cst_6 : f32 to vector<1x128xf32>
    %16 = arith.addf %14, %15 : vector<1x128xf32>
    %17 = math.rsqrt %16 : vector<1x128xf32>
    %c0_7 = arith.constant 0 : index
    %c0_8 = arith.constant 0 : index
    %18 = vector.load %arg3[%c0_7, %c0_8] : memref<32x1xf32, #tpu.memory_space<vmem>>, vector<32x1xf32>
    %19 = vector.broadcast %8 : vector<1x128xf32> to vector<32x128xf32>
    %20 = arith.subf %1, %19 : vector<32x128xf32>
    %21 = vector.broadcast %17 : vector<1x128xf32> to vector<32x128xf32>
    %22 = vector.broadcast %18 : vector<32x1xf32> to vector<32x128xf32>
    %23 = arith.mulf %21, %22 : vector<32x128xf32>
    %24 = arith.mulf %20, %23 : vector<32x128xf32>
    %c0_9 = arith.constant 0 : index
    %c0_10 = arith.constant 0 : index
    %25 = vector.load %arg4[%c0_9, %c0_10] : memref<32x1xf32, #tpu.memory_space<vmem>>, vector<32x1xf32>
    %26 = vector.broadcast %25 : vector<32x1xf32> to vector<32x128xf32>
    %27 = arith.addf %24, %26 : vector<32x128xf32>
    %c0_11 = arith.constant 0 : index
    %c0_12 = arith.constant 0 : index
    %c0_13 = arith.constant 0 : index
    %28 = vector.load %arg5[%c0_11, %c0_12, %c0_13] : memref<1x32x128xf32, #tpu.memory_space<vmem>>, vector<1x32x128xf32>
    %29 = vector.shape_cast %28 : vector<1x32x128xf32> to vector<32x128xf32>
    %30 = vector.shape_cast %27 : vector<32x128xf32> to vector<1x32x128xf32>
    tpu.vector_store %arg5[%c0_11, %c0_12, %c0_13], %30 {strides = array<i32>} : memref<1x32x128xf32, #tpu.memory_space<vmem>>, vector<1x32x128xf32>,
    return
  }
  func.func @transform_0(%arg0: i32, %arg1: i32) -> (i32, i32, i32) {
    %c0_i32 = arith.constant 0 : i32
    %c0_i32_0 = arith.constant 0 : i32
    return %arg0, %c0_i32, %arg1 : i32, i32, i32
  }
  func.func @transform_1(%arg0: i32, %arg1: i32) -> (i32, i32) {
    %c0_i32 = arith.constant 0 : i32
    %c0_i32_0 = arith.constant 0 : i32
    %c0_i32_1 = arith.constant 0 : i32
    return %c0_i32, %c0_i32_0 : i32, i32
  }
  func.func @transform_2(%arg0: i32, %arg1: i32) -> (i32, i32) {
    %c0_i32 = arith.constant 0 : i32
    %c0_i32_0 = arith.constant 0 : i32
    %c0_i32_1 = arith.constant 0 : i32
    return %c0_i32, %c0_i32_0 : i32, i32
  }
  func.func @transform_3(%arg0: i32, %arg1: i32) -> (i32, i32, i32) {
    %c0_i32 = arith.constant 0 : i32
    %c0_i32_0 = arith.constant 0 : i32
    return %arg0, %c0_i32, %arg1 : i32, i32, i32
  }
}

</mosaic_0001>

<bundles_post_ra>
// kernel: tpu_custom_call.1
= control target key start
LH: loop header
LB: loop body
LE: loop exit
PB: predicated region body
PF: predicated region fallthrough
CT: control target
= control target key end

     0   :  { %8 = vsyncpa [#allocation3], 0  ;;  %s902_s0 = inlined_call_operand.hbm [shape: f32[2,32,256], index: 0, kind: input, shape index: {}]   ;;  %s903_s1 = inlined_call_operand.vmem [shape: f32[32,1], index: 1, kind: input, shape index: {}]   ;;  %s904_s2 = inlined_call_operand.vmem [shape: f32[32,1], index: 2, kind: input, shape index: {}]   ;;  %s905_s3 = inlined_call_operand.hbm [shape: f32[2,32,256], index: 3, kind: output, shape index: {}]  }
   0x1   :  { %10 = vsyncpa [#allocation3 + $0x1], 0 }
   0x2   :  { %11 = vsyncpa [#allocation4], 0 }
   0x3   :  { %13 = vsyncpa [#allocation4 + $0x1], 0  ;;  %s673_s12 = smov 0   ;;  %s675_s13 = smov 0  }
   0x4   :  { %s677_s14 = smov 0   ;;  %s679_s15 = smov 0  }
   0x5   :  { %s681_s16 = smov 0   ;;  %s683_s17 = smov 0  }
   0x6   :  { %s685_s18 = smov 0   ;;  %s687_s19 = smov 0  }
   0x7 LB: > { %s410_s20 = sadd.s32 4294967295, %s642_s19   ;;  %s411_s21 = sadd.s32 4294967294, %s642_s19   ;;  %s642_s19 = sphi %s687_s19, %s19_s19   ;;  %s638_s18 = sphi %s685_s18, %s923_s18   ;;  %s634_s17 = sphi %s683_s17, %s922_s17   ;;  %s630_s16 = sphi %s681_s16, %s921_s16   ;;  %s626_s15 = sphi %s679_s15, %s920_s15   ;;  %s622_s14 = sphi %s677_s14, %s919_s14   ;;  %s618_s13 = sphi %s675_s13, %s918_s13   ;;  %s614_s12 = sphi %s673_s12, %s917_s12  }
   0x8   : > { %s28_s22 = sadd.s32 1, %s634_s17  ;;  %s31_s23 = sadd.s32 1, %s638_s18 }
   0x9   : > { %p29_p0 = scmp.ge.s32.totalorder %s28_s22, 2  ;;  %s40_s24 = sadd.s32 1, %s622_s14 }
   0xa   : > { %p47_p1 = scmp.ne.s32.totalorder %s622_s14, %s618_s13  ;;  %p48_p2 = scmp.eq.s32.totalorder %s642_s19, 0 }
   0xb   : > { %s925_s22 = smov (%p29_p0, %s28_s22), 0  ;;  %s927_s23 = smov (!%p29_p0, %s31_s23), %s638_s18 }
   0xc   : > { %s36_s25 = ssub.s32 %s634_s17, %s925_s22  ;;  %p726_p3 = por %p48_p2, %p47_p1 }
   0xd   : > { %p33_p4 = scmp.ge.s32.totalorder %s927_s23, 2  ;;  %p53_p5 = scmp.ne.s32.totalorder %s618_s13, %s614_s12 }
   0xe   : > { %p54_p6 = scmp.eq.s32.totalorder %s410_s20, 0  ;;  %p121_p7 = scmp.eq.s32.totalorder %s410_s20, 3 }
   0xf   : > { %s929_s23 = smov (%p33_p4, %s927_s23), 0  ;;  %p127_p10 = scmp.eq.s32.totalorder %s411_s21, 3 }
  0x10   : > { %909 = sst [smem:[#allocation8_spill]] %s929_s23  ;;  %p734_p8 = por %p54_p6, %p53_p5 }
  0x11   : > { %p738_p9 = por %p121_p7, %p47_p1  ;;  %s35_s29 = ssub.s32 %s638_s18, %s929_s23 }
  0x12   : > { %s37_s30 = sor.u32 %s36_s25, %s35_s29  ;;  %p744_p12 = por %p127_p10, %p53_p5 }
  0x13   : > { %s911_s28 = scalar_select %p738_p9, 1, 0 }
  0x14   : > { %p38_p11 = scmp.eq.s32.totalorder %s37_s30, 0  ;;  %p437_p13 = scmp.lt.s32.totalorder %s642_s19, 4 }
  0x15   : > { %s912_s4 = scalar_select %p744_p12, 1, 0 }
  0x16   : > { %s153_s5 = sand.u32 1, %s622_s14   ;;  %s415_s8 = sshll.u32 %s638_s18, 3 }
  0x17   : > { %s751_s6 = scalar_select %p38_p11, %s622_s14, %s40_s24  }
  0x18   : > { %s414_s7 = sshll.u32 %s153_s5, 5  ;;  %s162_s9 = sadd.s32 %s634_s17, %s415_s8 }
  0x19   : > { %s157_s10 = scalar_lea.vmem [#allocation2], %s414_s7  ;;  %s416_s20 = sshll.u32 %s162_s9, 7 }
  0x1a   : > { %s165_s11 = sshll.u32 %s157_s10, 4  ;;  %s760_s25 = scalar_lea.hbm %s902_s0, %s416_s20  ;;  %s755_s11 = int_to_ptr.vmem [resolvable:$true] %s165_s11 }
  0x1b   : > { %p764_p0 = pnand %p437_p13, %p726_p3  ;;  %s768_s29 = scalar_lea.sflag [#allocation3], %s153_s5 }
  0x1c   : > { %s514_s30 = scalar_lea.hbm %s760_s25, 512  ;;  %s519_s7 = scalar_lea.hbm %s902_s0, 2048 }
  0x1d   : > { %p515_p1 = scmp.ne.s32.totalorder %s760_s25, %s514_s30  ;;  %p516_p2 = pneg %p764_p0 }
  0x1e   : > { %p520_p3 = scmp.lt.u32.totalorder %s760_s25, %s902_s0  ;;  %p521_p6 = scmp.lt.u32.totalorder %s519_s7, %s514_s30 }
  0x1f   : > { %p517_p4 = pnand %p516_p2, %p515_p1  ;;  %p523_p10 = scmp.lt.u32.totalorder %s514_s30, %s760_s25 }
  0x20   : > { %p522_p7 = por %p521_p6, %p520_p3 }
  0x21   : > { %p518_p5 = pneg %p517_p4 }
  0x22   : > { %p524_p11 = por %p523_p10, %p522_p7 }
  0x24   : > { %p525_p13 = pnand %p524_p11, %p518_p5 }
  0x26   : > { %528 = shalt.err (!%p525_p13)
}
  0x27   : > { %s529_s5 = scalar_lea.vmem %s755_s11, 512  ;;  %s644_s10 = smov [#allocation2]  }
  0x28   : > { %p530_p1 = scmp.ne.s32.totalorder %s755_s11, %s529_s5  ;;  %s534_s20 = sshll.u32 %s644_s10, 4  ;;  %s535_s20 = int_to_ptr.vmem [resolvable:$false] %s534_s20 }
  0x29   : > { %s536_s21 = scalar_lea.vmem %s535_s20, 1024  ;;  %p537_p9 = scmp.lt.s32.totalorder %s755_s11, %s535_s20 }
  0x2a   : > { %p532_p4 = pnand %p530_p1, %p516_p2  ;;  %p538_p3 = scmp.lt.s32.totalorder %s536_s21, %s529_s5 }
  0x2c   : > { %p533_p12 = pneg %p532_p4  ;;  %p539_p6 = por %p538_p3, %p537_p9 }
  0x2e   : > { %p540_p7 = pnand %p539_p6, %p533_p12 }
  0x30   : > { %543 = shalt.err (!%p540_p7)
}
  0x31   : > { %s645_s30 = smov 256   ;;  %s646_s23 = smov 128  }
  0x32   : > { %s647_s26 = smov 8   ;;  %p417_p2 = scmp.ge.s32.totalorder %s642_s19, 1 }
  0x33   : > { %432 = dma.hbm_to_vmem [thread:$0]  (!%p764_p0), %s760_s25, 512, %s755_s11, %s768_s29, %s645_s30, %s646_s23, %s647_s26  }
  0x34   : > { %p173_p5 = scmp.lt.s32.totalorder %s642_s19, 5 }
  0x36   : > { %p174_p10 = pnand %p417_p2, %p173_p5 }
  0x37   : > { %s799_s7 = sand.u32 (!%p174_p10), 1, %s618_s13  }
  0x38   : > { %177 = sbr.rel (%p174_p10) target bundleno = 224 (0xe0), region = 32  ;;  %s418_s8 = sshll.u32 (!%p174_p10), %s799_s7, 5 }
  0x39   : > { %s180_s9 = scalar_lea.sflag (!%p174_p10), [#allocation3], %s799_s7  ;;  %s805_s5 = scalar_lea.vmem (!%p174_p10), [#allocation2], %s418_s8 }
  0x3f   : > { %605 = dma.done.wait (%p734_p8), %s180_s9, 512  }
  0x40   : > { %607 = vsyncadd (%p734_p8), %s180_s9, 4294966784  ;;  %v648_v0 = vmov 0   ;;  %v241_v1 = vld [vmem:[%s903_s1 + $0x10] sm:$0xff]  ;;  %v239_v2 = vld [vmem:[%s903_s1] sm:$0xff]  ;;  %s205_s20 = scalar_lea.vmem [#allocation5], %s418_s8  ;;  %s308_s30 = scalar_lea.sflag [#allocation4], %s799_s7 }
  0x41   : > { %511 = vset.pattern.permute.xlu1 %v648_v0  ;;  %510 = vset.pattern.permute.xlu0 %v648_v0  ;;  %v242_v3 = vld [vmem:[%s903_s1 + $0x18] sm:$0xff]  ;;  %v240_v4 = vld [vmem:[%s903_s1 + $0x8] sm:$0xff]  ;;  %v275_v6 = vld [vmem:[%s904_s2] sm:$0xff]  ;;  %s322_s27 = sshll.u32 %s205_s20, 4  ;;  %p914_p9 = scmp.ne.s32.totalorder %s911_s28, 0  ;;  %s843_s27 = int_to_ptr.vmem [resolvable:$true] %s322_s27 }
  0x42   : > { %259 = vperm.xlu1 %511, %v241_v1   ;;  %249 = vperm.xlu0 %510, %v239_v2   ;;  %v276_v5 = vld [vmem:[%s904_s2 + $0x8] sm:$0xff]  ;;  %v278_v7 = vld [vmem:[%s904_s2 + $0x18] sm:$0xff]  ;;  %v277_v8 = vld [vmem:[%s904_s2 + $0x10] sm:$0xff]  ;;  %s544_s23 = scalar_lea.vmem %s843_s27, 512  ;;  %s649_s26 = smov [#allocation5]  }
  0x43   : > { %v206_v9 = vld [vmem:[%s805_s5] sm:$0xff]  ;;  %v207_v10 = vld [vmem:[%s805_s5 + $0x8] sm:$0xff]  ;;  %v208_v14 = vld [vmem:[%s805_s5 + $0x10] sm:$0xff]  ;;  %p545_p8 = scmp.ne.s32.totalorder %s843_s27, %s544_s23  ;;  %s548_s9 = sshll.u32 %s649_s26, 4  ;;  %s549_s9 = int_to_ptr.vmem [resolvable:$false] %s548_s9 }
  0x44   : > { %v210_v11 = vadd.f32 %v207_v10, %v206_v9  ;;  %v219_v12 = vmul.f32 %v206_v9, %v206_v9  ;;  %v220_v13 = vmul.f32 %v207_v10, %v207_v10  ;;  %v221_v16 = vmul.f32 %v208_v14, %v208_v14  ;;  %v209_v18 = vld [vmem:[%s805_s5 + $0x18] sm:$0xff]  ;;  %s421_s5 = sshll.u32 %s630_s16, 3  ;;  %s550_s11 = scalar_lea.vmem %s549_s9, 1024 }
  0x45   : > { %v222_v20 = vmul.f32 %v209_v18, %v209_v18  ;;  %s319_s10 = sadd.s32 %s626_s15, %s421_s5  ;;  %p546_p12 = pnand %p545_p8, %p914_p9 }
  0x46   : > { %264 = vperm.xlu1 %511, %v242_v3   ;;  %254 = vperm.xlu0 %510, %v240_v4   ;;  %v211_v15 = vadd.f32 %v210_v11, %v208_v14  ;;  %v223_v17 = vadd.f32 %v220_v13, %v219_v12  ;;  %s422_s21 = sshll.u32 %s319_s10, 7  ;;  %p551_p11 = scmp.lt.s32.totalorder %s843_s27, %s549_s9 }
  0x47   : > { %s848_s8 = scalar_lea.hbm %s905_s3, %s422_s21  ;;  %p547_p0 = pneg %p546_p12 }
  0x48   : > { %v212_v19 = vadd.f32 %v211_v15, %v209_v18  ;;  %v224_v21 = vadd.f32 %v223_v17, %v221_v16  ;;  %p552_p13 = scmp.lt.s32.totalorder %s550_s11, %s544_s23 }
  0x4a   : > { %286 = vperm.xlu1 %511, %v276_v5   ;;  %281 = vperm.xlu0 %510, %v275_v6   ;;  %v213_v22 = vrot.slane %v212_v19, 4  ;;  %v225_v23 = vadd.f32 %v224_v21, %v222_v20  ;;  %p553_p1 = por %p552_p13, %p551_p11 }
  0x4c   : > { %v214_v24 = vadd.f32 %v213_v22, %v212_v19  ;;  %v226_v25 = vrot.slane %v225_v23, 4  ;;  %p554_p4 = pnand %p553_p1, %p547_p0 }
  0x4e   : > { %296 = vperm.xlu1 %511, %v278_v7   ;;  %291 = vperm.xlu0 %510, %v277_v8   ;;  %v215_v26 = vrot.slane %v214_v24, 2  ;;  %v227_v27 = vadd.f32 %v226_v25, %v225_v23 }
  0x50   : > { %v216_v28 = vadd.f32 %v215_v26, %v214_v24  ;;  %v228_v29 = vrot.slane %v227_v27, 2 }
  0x52   : > { %v217_v30 = vrot.slane %v216_v28, 1  ;;  %v229_v31 = vadd.f32 %v228_v29, %v227_v27 }
  0x54   : > { %v218_v32 = vadd.f32 %v217_v30, %v216_v28  ;;  %v230_v33 = vrot.slane %v229_v31, 1 }
  0x56   : > { %v231_v34 = vadd.f32 %v230_v33, %v229_v31  ;;  %v232_v35 = vmul.f32 0.03125, %v218_v32 }
  0x58   : > { %v233_v36 = vmul.f32 0.03125, %v231_v34  ;;  %v234_v37 = vmul.f32 %v232_v35, %v232_v35  ;;  %v244_v45 = vsub.f32 %v207_v10, %v232_v35  ;;  %v243_v46 = vsub.f32 %v206_v9, %v232_v35 }
  0x59   : > { %v246_v50 = vsub.f32 %v209_v18, %v232_v35  ;;  %v245_v51 = vsub.f32 %v208_v14, %v232_v35 }
  0x5a   : > { %v235_v38 = vsub.f32 %v233_v36, %v234_v37 }
  0x5c   : > { %v236_v39 = vmax.f32 %v235_v38, 0.0 }
  0x5e   : > { %v237_v40 = vadd.f32 1e-05, %v236_v39 }
  0x60   : > { %512 = vrsqrt.f32 %v237_v40 }
  0x6a   : > { %v513_v41 = vpop.eup %512 }
  0xc1   : > { %v260_v42 = vpop.permute.xlu1 %259  ;;  %v250_v43 = vpop.permute.xlu0 %249 }
  0xc2   : > { %v267_v44 = vmul.f32 %v513_v41, %v250_v43  ;;  %v269_v52 = vmul.f32 %v513_v41, %v260_v42 }
  0xc4   : > { %v271_v55 = vmul.f32 %v267_v44, %v243_v46  ;;  %v273_v61 = vmul.f32 %v269_v52, %v245_v51 }
  0xc5   : > { %v265_v47 = vpop.permute.xlu1 %264  ;;  %v255_v48 = vpop.permute.xlu0 %254 }
  0xc6   : > { %v268_v49 = vmul.f32 %v513_v41, %v255_v48  ;;  %v270_v53 = vmul.f32 %v513_v41, %v265_v47 }
  0xc8   : > { %v272_v54 = vmul.f32 %v268_v49, %v244_v45  ;;  %v274_v60 = vmul.f32 %v270_v53, %v246_v50 }
  0xc9   : > { %v287_v56 = vpop.permute.xlu1 %286  ;;  %v282_v57 = vpop.permute.xlu0 %281 }
  0xca   : > { %v300_v58 = vadd.f32 %v287_v56, %v272_v54  ;;  %v299_v59 = vadd.f32 %v282_v57, %v271_v55 }
  0xcc   : > { %304 = vst [vmem:[%s205_s20 + $0x8] sm:$0xff] %v300_v58  ;;  %303 = vst [vmem:[%s205_s20] sm:$0xff] %v299_v59 }
  0xcd   : > { %v297_v62 = vpop.permute.xlu1 %296  ;;  %v292_v63 = vpop.permute.xlu0 %291 }
  0xce   : > { %v302_v0 = vadd.f32 %v297_v62, %v274_v60  ;;  %v301_v1 = vadd.f32 %v292_v63, %v273_v61 }
  0xd0   : > { %306 = vst [vmem:[%s205_s20 + $0x18] sm:$0xff] %v302_v0  ;;  %305 = vst [vmem:[%s205_s20 + $0x10] sm:$0xff] %v301_v1 }
  0xd1   : > { %557 = shalt.err (!%p554_p4)
}
  0xd2   : > { %s558_s25 = scalar_lea.hbm %s848_s8, 512  ;;  %s562_s5 = scalar_lea.hbm %s905_s3, 2048 }
  0xd3   : > { %p559_p3 = scmp.ne.s32.totalorder %s848_s8, %s558_s25  ;;  %p563_p2 = scmp.lt.u32.totalorder %s848_s8, %s905_s3 }
  0xd4   : > { %p564_p5 = scmp.lt.u32.totalorder %s562_s5, %s558_s25  ;;  %p566_p8 = scmp.lt.u32.totalorder %s558_s25, %s848_s8 }
  0xd5   : > { %p560_p6 = pnand %p559_p3, %p914_p9 }
  0xd6   : > { %p565_p10 = por %p564_p5, %p563_p2 }
  0xd7   : > { %p561_p7 = pneg %p560_p6 }
  0xd8   : > { %p567_p12 = por %p566_p8, %p565_p10 }
  0xda   : > { %p568_p0 = pnand %p567_p12, %p561_p7 }
  0xdc   : > { %571 = shalt.err (!%p568_p0)
}
  0xdd   : > { %s650_s21 = smov 128   ;;  %s651_s15 = smov 256  }
  0xde   : > { %s652_s16 = smov 8  }
  0xdf   : > { %427 = dma.vmem_to_hbm [thread:$0]  (%p914_p9), %s843_s27, 512, %s848_s8, %s308_s30, %s650_s21, %s651_s15, %s652_s16  }
  0xe0 PF: > { %p438_p11 = scmp.ge.s32.totalorder %s642_s19, 2  ;;  %s337_s23 = sand.u32 1, %s614_s12  }
  0xe1   : > { %p915_p13 = scmp.ne.s32.totalorder %s912_s4, 0  ;;  %s338_s26 = scalar_lea.sflag [#allocation4], %s337_s23 }
  0xe3   : > { %p434_p1 = pnand %p438_p11, %p915_p13 }
  0xe5   : > { %609 = dma.done.wait (!%p434_p1), %s338_s26, 512  }
  0xe6   : > { %611 = vsyncadd (!%p434_p1), %s338_s26, 4294966784  ;;  %s19_s19 = sadd.s32 1, %s642_s19   ;;  %s916_s28 = sld [smem:[#allocation8_spill]] }
  0xe7   : > { %p16_p4 = scmp.ge.s32.totalorder %s19_s19, 6   ;;  %s917_s12 = smov %s618_s13 }
  0xe8   : > { %s918_s13 = smov %s622_s14  ;;  %s919_s14 = smov %s751_s6 }
  0xe9   : > { %s920_s15 = smov %s634_s17  ;;  %s921_s16 = smov %s638_s18 }
  0xea   : > { %s922_s17 = smov %s925_s22  ;;  %18 = sbr.rel (!%p16_p4) target bundleno = 7 (0x7), region = 77 }
  0xec   : > { %s923_s18 = smov %s916_s28 }
  0xf1   :  { %343 = vsyncpa [#allocation3], 1 }
  0xf2   :  { %345 = vsyncpa [#allocation3 + $0x1], 1 }
  0xf3   :  { %346 = vsyncpa [#allocation4], 1 }
  0xf4   :  { %348 = vsyncpa [#allocation4 + $0x1], 1 }

</bundles_post_ra>
